<compile_context>
chip_gen: v7x
topology: tpu7x:2x2x1
jax: 0.10.0
libtpu: 0.0.40
codegen_flags: <defaults>
</compile_context>

<pallas_src>
import functools

import jax
import jax.numpy as jnp
from jax.experimental import pallas as pl
from jax.experimental.pallas import tpu as pltpu


def _round_up(x, m):
    return (x + m - 1) // m * m


def _basic_conv_kernel(x_ref, w_ref, b_ref, o_ref, patches_ref, *,
                       K, stride, Ci, Cip, Nb, Wd, Lwide, Lband, compute_dtype):
    """One grid step = Nb batch elements.

    x_ref       : (Nb, stride*Ci, Hpe*Wd)  residue-decimated, flattened padded input
    w_ref       : (Co, K*K*Cip)            im2col weights (zero cols for channel pad)
    b_ref       : (Co, 1)                  bias
    o_ref       : (Nb, Co, Lband)          lane-dense "wide" output (compacted in wrapper)
    patches_ref : (K*K*Cip, Nb*Lband)      VMEM im2col scratch
    """
    if Cip > Ci:
        # Hoisted once (broadcasts are not CSE'd inside loops).
        zpad = jnp.zeros((Cip - Ci, Lwide), compute_dtype)

    # --- Stage im2col patches --------------------------------------------------
    # Tap (kh, kw) of image b occupies rows [t*Cip, (t+1)*Cip) and columns
    # [b*Lband, b*Lband + Lwide) of the patch matrix.
    # Wide-row identity (residue-decimated input, r = kw % stride):
    #   x_pad[ci, i*stride + kh, j*stride + kw]
    #     == x_dec[r*Ci + ci, (i*stride + kh)*Wd + j + kw//stride]
    #     == x_dec_flat[r*Ci + ci, q + kh*Wd + kw//stride],  q = i*(stride*Wd) + j
    # so every tap is a single CONTIGUOUS slice — no lane-strided access for any
    # stride.  Garbage wide columns are discarded in the wrapper.
    for kh in range(K):
        for kw in range(K):
            t = kh * K + kw
            r = kw % stride
            delta = kh * Wd + kw // stride
            for b in range(Nb):
                tap = x_ref[b, r * Ci:(r + 1) * Ci, pl.ds(delta, Lwide)]
                tap = tap.astype(compute_dtype)
                if Cip > Ci:
                    # Full 8-sublane, tile-aligned store; the zero rows meet zero
                    # weight columns so they contribute nothing to the dot.
                    tap = jnp.concatenate([tap, zpad], axis=0)
                patches_ref[t * Cip:(t + 1) * Cip,
                            b * Lband:b * Lband + Lwide] = tap

    # --- One MXU contraction over K*K*Cip for all Nb images, f32 accumulation --
    y = jnp.dot(w_ref[...].astype(compute_dtype), patches_ref[...],
                preferred_element_type=jnp.float32)           # (Co, Nb*Lband)

    # Bias + ReLU on the lane-dense (Co, spatial) layout.
    y = jnp.maximum(y + b_ref[...], 0.0)

    # --- Lane-dense stores: one (Co, Lband) store per image, 128-aligned lane
    # offset, full width -> unmasked vst.  No per-row compaction in-kernel.
    for b in range(Nb):
        o_ref[b, :, :] = y[:, b * Lband:(b + 1) * Lband].astype(o_ref.dtype)


def basic_conv(x_nchw, weight, bias, *, stride=1, compute_dtype=jnp.float32,
               batch_block=8):
    """BasicConv forward: Conv2d(pad=K//2, stride) + bias + ReLU.

    x_nchw : (N, Cin, H, W) float32
    weight : (Cout, Cin, K, K) float32   (PyTorch layout)
    bias   : (Cout,) float32
    returns (N, Cout, Ho, Wo) float32 (NCHW, matching the PyTorch module)
    """
    N, Ci, H, W = x_nchw.shape
    Co, Ci_w, K, K2 = weight.shape
    assert Ci == Ci_w and K == K2
    assert stride >= 1
    pad = K // 2
    Ho = (H + 2 * pad - K) // stride + 1
    Wo = (W + 2 * pad - K) // stride + 1

    # --- geometry --------------------------------------------------------------
    Wpe = W + 2 * pad
    Wpc = _round_up(Wpe, stride)      # right-pad so columns decimate evenly
    Wd = Wpc // stride                # decimated width per column residue
    Ws = stride * Wd                  # "wide" output row width
    Lwide = Ho * Ws                   # wide output length per image
    Lband = _round_up(Lwide, 128)     # 128-lane-aligned per-image band
    # Enough bottom rows that every wide tap window stays in bounds.
    need = Ho * Ws + (K - 1) * Wd + (K - 1) // stride
    Hpe = max((need + Wd - 1) // Wd, H + pad)
    Lp = Hpe * Wd
    # Channel pad so each tap's row block is 8-sublane aligned.
    Cip = _round_up(Ci, 8)

    # Batch block: largest divisor of N that is <= batch_block (toy N=2 -> one step).
    Nb = 1
    for d in range(1, min(N, batch_block) + 1):
        if N % d == 0:
            Nb = d
    G = N // Nb

    # --- input prep: pad once, residue-decimate columns, flatten ---------------
    x_pad = jnp.pad(
        x_nchw,
        ((0, 0), (0, 0), (pad, Hpe - pad - H), (pad, Wpc - pad - W)))
    # x_dec[n, r*Ci + ci, h*Wd + jj] = x_pad[n, ci, h, jj*stride + r]
    x_dec = (x_pad.reshape(N, Ci, Hpe, Wd, stride)
             .transpose(0, 4, 1, 2, 3)
             .reshape(N, stride * Ci, Lp))

    # --- im2col weight matrix (channel-padded) + bias --------------------------
    # w_mat[co, (kh*K + kw)*Cip + ci] = weight[co, ci, kh, kw]; pad cols are 0.
    w_mat = jnp.transpose(weight, (0, 2, 3, 1))                       # (Co,K,K,Ci)
    w_mat = jnp.pad(w_mat, ((0, 0), (0, 0), (0, 0), (0, Cip - Ci)))
    w_mat = w_mat.reshape(Co, K * K * Cip)
    b2d = bias.reshape(Co, 1)

    # --- VMEM budget: derive from actual block/scratch sizes, cap at 32 MiB ----
    MiB = 1024 * 1024
    xb = jnp.dtype(x_nchw.dtype).itemsize
    cb = jnp.dtype(compute_dtype).itemsize
    vmem_need = (2 * Nb * stride * Ci * Lp * xb          # input block, double-buffered
                 + 2 * Co * K * K * Cip * 4 + 2 * Co * 4  # weights + bias
                 + 2 * Nb * Co * Lband * xb               # output block, double-buffered
                 + K * K * Cip * Nb * Lband * cb)         # patches scratch
    vmem_limit = min(max(2 * vmem_need, 8 * MiB), 32 * MiB)
    if vmem_need * 5 // 4 > 32 * MiB:
        # TODO(synk): at tiles this large, add the Ho-block spatial grid axis
        # instead of growing the limit.
        vmem_limit = vmem_need * 5 // 4

    kernel = functools.partial(
        _basic_conv_kernel,
        K=K, stride=stride, Ci=Ci, Cip=Cip, Nb=Nb,
        Wd=Wd, Lwide=Lwide, Lband=Lband, compute_dtype=compute_dtype)

    out_wide = pl.pallas_call(
        kernel,
        out_shape=jax.ShapeDtypeStruct((N, Co, Lband), x_nchw.dtype),
        grid_spec=pltpu.PrefetchScalarGridSpec(
            num_scalar_prefetch=0,
            grid=(G,),
            in_specs=[
                pl.BlockSpec((Nb, stride * Ci, Lp), lambda g: (g, 0, 0)),
                # Constant-index (grid-resident) weight/bias blocks.  For large
                # channel counts they could be single-buffered via
                # pipeline_mode=pl.Buffered(1); at these sizes it is noise.
                pl.BlockSpec((Co, K * K * Cip), lambda g: (0, 0)),
                pl.BlockSpec((Co, 1), lambda g: (0, 0)),
            ],
            out_specs=pl.BlockSpec((Nb, Co, Lband), lambda g: (g, 0, 0)),
            scratch_shapes=[pltpu.VMEM((K * K * Cip, Nb * Lband), compute_dtype)],
        ),
        compiler_params=pltpu.CompilerParams(
            dimension_semantics=("parallel",),
            vmem_limit_bytes=int(vmem_limit)),
    )(x_dec, w_mat, b2d)

    # Wide -> NCHW: free contiguous reshape + cheap fused slices in XLA.
    out = out_wide[:, :, :Lwide].reshape(N, Co, Ho, Ws)[:, :, :, :Wo]
    return out


def _reference(x_nchw, weight, bias, *, stride=1):
    K = weight.shape[-1]
    pad = K // 2
    y = jax.lax.conv_general_dilated(
        x_nchw, weight,
        window_strides=(stride, stride),
        padding=((pad, pad), (pad, pad)),
        dimension_numbers=("NCHW", "OIHW", "NCHW"))
    y = y + bias.reshape(1, -1, 1, 1)
    return jnp.maximum(y, 0.0)


if __name__ == "__main__":
    # BasicConv(in_channel=4, out_channel=8, kernel_size=3, stride=1)
    N, Ci, H, W = 2, 4, 16, 16
    Co, K = 8, 3

    key = jax.random.PRNGKey(0)
    kx, kw, kb = jax.random.split(key, 3)
    x = jax.random.normal(kx, (N, Ci, H, W), dtype=jnp.float32)
    # Deterministic synthetic parameters (shapes match nn.Conv2d(4, 8, 3, bias=True)).
    weight = jax.random.normal(kw, (Co, Ci, K, K), dtype=jnp.float32) * 0.1
    bias = jax.random.normal(kb, (Co,), dtype=jnp.float32) * 0.1

    # stride=1 (the module's common config)
    out = jax.block_until_ready(basic_conv(x, weight, bias, stride=1))
    ref = _reference(x, weight, bias, stride=1)
    assert out.shape == ref.shape, (out.shape, ref.shape)
    assert jnp.allclose(out, ref, atol=1e-4, rtol=1e-4), \
        float(jnp.max(jnp.abs(out - ref)))

    # stride=2: validates the residue-decimated staging path (no lane-strided slices).
    out2 = jax.block_until_ready(basic_conv(x, weight, bias, stride=2))
    ref2 = _reference(x, weight, bias, stride=2)
    assert out2.shape == ref2.shape, (out2.shape, ref2.shape)
    assert jnp.allclose(out2, ref2, atol=1e-4, rtol=1e-4), \
        float(jnp.max(jnp.abs(out2 - ref2)))

    print("KERNEL_OK")
</pallas_src>

<mosaic_0001>
module attributes {stable_mosaic.version = 11 : i64} {
  func.func @_basic_conv_kernel(%arg0: i32, %arg1: memref<2x4x342xf32, #tpu.memory_space<vmem>>, %arg2: memref<8x72xf32, #tpu.memory_space<vmem>>, %arg3: memref<8x1xf32, #tpu.memory_space<vmem>>, %arg4: memref<2x8x384xf32, #tpu.memory_space<vmem>>, %arg5: memref<72x768xf32, #tpu.memory_space<vmem>>) attributes {dimension_semantics = [#tpu.dimension_semantics<parallel>], iteration_bounds = array<i64: 1>, scalar_prefetch = 0 : i64, scratch_operands = 1 : i64, tpu.core_type = #tpu.core_type<tc>, window_params = [{transform_indices = @transform_0, window_bounds = array<i64: 2, 4, 342>}, {pipeline_mode = #tpu.pipeline_mode<synchronous>, transform_indices = @transform_1, window_bounds = array<i64: 8, 72>}, {pipeline_mode = #tpu.pipeline_mode<synchronous>, transform_indices = @transform_2, window_bounds = array<i64: 8, 1>}, {transform_indices = @transform_3, window_bounds = array<i64: 2, 8, 384>}]} {
    %cst = arith.constant 0.000000e+00 : f32
    %0 = vector.broadcast %cst : f32 to vector<4x288xf32>
    %c0 = arith.constant 0 : index
    %c0_0 = arith.constant 0 : index
    %c0_1 = arith.constant 0 : index
    %1 = vector.load %arg1[%c0, %c0_0, %c0_1] : memref<2x4x342xf32, #tpu.memory_space<vmem>>, vector<1x4x288xf32>
    %2 = vector.shape_cast %1 : vector<1x4x288xf32> to vector<4x288xf32>
    %3 = tpu.concatenate %2, %0 in 0 : vector<4x288xf32>, vector<4x288xf32> -> vector<8x288xf32>
    %c0_2 = arith.constant 0 : index
    %c0_3 = arith.constant 0 : index
    %4 = vector.load %arg5[%c0_2, %c0_3] : memref<72x768xf32, #tpu.memory_space<vmem>>, vector<8x288xf32>
    tpu.vector_store %arg5[%c0_2, %c0_3], %3 {strides = array<i32>} : memref<72x768xf32, #tpu.memory_space<vmem>>, vector<8x288xf32>,
    %c1 = arith.constant 1 : index
    %c0_4 = arith.constant 0 : index
    %c0_5 = arith.constant 0 : index
    %5 = vector.load %arg1[%c1, %c0_4, %c0_5] : memref<2x4x342xf32, #tpu.memory_space<vmem>>, vector<1x4x288xf32>
    %6 = vector.shape_cast %5 : vector<1x4x288xf32> to vector<4x288xf32>
    %7 = tpu.concatenate %6, %0 in 0 : vector<4x288xf32>, vector<4x288xf32> -> vector<8x288xf32>
    %c0_6 = arith.constant 0 : index
    %c384 = arith.constant 384 : index
    %8 = vector.load %arg5[%c0_6, %c384] : memref<72x768xf32, #tpu.memory_space<vmem>>, vector<8x288xf32>
    tpu.vector_store %arg5[%c0_6, %c384], %7 {strides = array<i32>} : memref<72x768xf32, #tpu.memory_space<vmem>>, vector<8x288xf32>,
    %c0_7 = arith.constant 0 : index
    %c0_8 = arith.constant 0 : index
    %c1_9 = arith.constant 1 : index
    %9 = vector.load %arg1[%c0_7, %c0_8, %c1_9] : memref<2x4x342xf32, #tpu.memory_space<vmem>>, vector<1x4x288xf32>
    %10 = vector.shape_cast %9 : vector<1x4x288xf32> to vector<4x288xf32>
    %11 = tpu.concatenate %10, %0 in 0 : vector<4x288xf32>, vector<4x288xf32> -> vector<8x288xf32>
    %c8 = arith.constant 8 : index
    %c0_10 = arith.constant 0 : index
    %12 = vector.load %arg5[%c8, %c0_10] : memref<72x768xf32, #tpu.memory_space<vmem>>, vector<8x288xf32>
    tpu.vector_store %arg5[%c8, %c0_10], %11 {strides = array<i32>} : memref<72x768xf32, #tpu.memory_space<vmem>>, vector<8x288xf32>,
    %c1_11 = arith.constant 1 : index
    %c0_12 = arith.constant 0 : index
    %c1_13 = arith.constant 1 : index
    %13 = vector.load %arg1[%c1_11, %c0_12, %c1_13] : memref<2x4x342xf32, #tpu.memory_space<vmem>>, vector<1x4x288xf32>
    %14 = vector.shape_cast %13 : vector<1x4x288xf32> to vector<4x288xf32>
    %15 = tpu.concatenate %14, %0 in 0 : vector<4x288xf32>, vector<4x288xf32> -> vector<8x288xf32>
    %c8_14 = arith.constant 8 : index
    %c384_15 = arith.constant 384 : index
    %16 = vector.load %arg5[%c8_14, %c384_15] : memref<72x768xf32, #tpu.memory_space<vmem>>, vector<8x288xf32>
    tpu.vector_store %arg5[%c8_14, %c384_15], %15 {strides = array<i32>} : memref<72x768xf32, #tpu.memory_space<vmem>>, vector<8x288xf32>,
    %c0_16 = arith.constant 0 : index
    %c0_17 = arith.constant 0 : index
    %c2 = arith.constant 2 : index
    %17 = vector.load %arg1[%c0_16, %c0_17, %c2] : memref<2x4x342xf32, #tpu.memory_space<vmem>>, vector<1x4x288xf32>
    %18 = vector.shape_cast %17 : vector<1x4x288xf32> to vector<4x288xf32>
    %19 = tpu.concatenate %18, %0 in 0 : vector<4x288xf32>, vector<4x288xf32> -> vector<8x288xf32>
    %c16 = arith.constant 16 : index
    %c0_18 = arith.constant 0 : index
    %20 = vector.load %arg5[%c16, %c0_18] : memref<72x768xf32, #tpu.memory_space<vmem>>, vector<8x288xf32>
    tpu.vector_store %arg5[%c16, %c0_18], %19 {strides = array<i32>} : memref<72x768xf32, #tpu.memory_space<vmem>>, vector<8x288xf32>,
    %c1_19 = arith.constant 1 : index
    %c0_20 = arith.constant 0 : index
    %c2_21 = arith.constant 2 : index
    %21 = vector.load %arg1[%c1_19, %c0_20, %c2_21] : memref<2x4x342xf32, #tpu.memory_space<vmem>>, vector<1x4x288xf32>
    %22 = vector.shape_cast %21 : vector<1x4x288xf32> to vector<4x288xf32>
    %23 = tpu.concatenate %22, %0 in 0 : vector<4x288xf32>, vector<4x288xf32> -> vector<8x288xf32>
    %c16_22 = arith.constant 16 : index
    %c384_23 = arith.constant 384 : index
    %24 = vector.load %arg5[%c16_22, %c384_23] : memref<72x768xf32, #tpu.memory_space<vmem>>, vector<8x288xf32>
    tpu.vector_store %arg5[%c16_22, %c384_23], %23 {strides = array<i32>} : memref<72x768xf32, #tpu.memory_space<vmem>>, vector<8x288xf32>,
    %c0_24 = arith.constant 0 : index
    %c0_25 = arith.constant 0 : index
    %c18 = arith.constant 18 : index
    %25 = vector.load %arg1[%c0_24, %c0_25, %c18] : memref<2x4x342xf32, #tpu.memory_space<vmem>>, vector<1x4x288xf32>
    %26 = vector.shape_cast %25 : vector<1x4x288xf32> to vector<4x288xf32>
    %27 = tpu.concatenate %26, %0 in 0 : vector<4x288xf32>, vector<4x288xf32> -> vector<8x288xf32>
    %c24 = arith.constant 24 : index
    %c0_26 = arith.constant 0 : index
    %28 = vector.load %arg5[%c24, %c0_26] : memref<72x768xf32, #tpu.memory_space<vmem>>, vector<8x288xf32>
    tpu.vector_store %arg5[%c24, %c0_26], %27 {strides = array<i32>} : memref<72x768xf32, #tpu.memory_space<vmem>>, vector<8x288xf32>,
    %c1_27 = arith.constant 1 : index
    %c0_28 = arith.constant 0 : index
    %c18_29 = arith.constant 18 : index
    %29 = vector.load %arg1[%c1_27, %c0_28, %c18_29] : memref<2x4x342xf32, #tpu.memory_space<vmem>>, vector<1x4x288xf32>
    %30 = vector.shape_cast %29 : vector<1x4x288xf32> to vector<4x288xf32>
    %31 = tpu.concatenate %30, %0 in 0 : vector<4x288xf32>, vector<4x288xf32> -> vector<8x288xf32>
    %c24_30 = arith.constant 24 : index
    %c384_31 = arith.constant 384 : index
    %32 = vector.load %arg5[%c24_30, %c384_31] : memref<72x768xf32, #tpu.memory_space<vmem>>, vector<8x288xf32>
    tpu.vector_store %arg5[%c24_30, %c384_31], %31 {strides = array<i32>} : memref<72x768xf32, #tpu.memory_space<vmem>>, vector<8x288xf32>,
    %c0_32 = arith.constant 0 : index
    %c0_33 = arith.constant 0 : index
    %c19 = arith.constant 19 : index
    %33 = vector.load %arg1[%c0_32, %c0_33, %c19] : memref<2x4x342xf32, #tpu.memory_space<vmem>>, vector<1x4x288xf32>
    %34 = vector.shape_cast %33 : vector<1x4x288xf32> to vector<4x288xf32>
    %35 = tpu.concatenate %34, %0 in 0 : vector<4x288xf32>, vector<4x288xf32> -> vector<8x288xf32>
    %c32 = arith.constant 32 : index
    %c0_34 = arith.constant 0 : index
    %36 = vector.load %arg5[%c32, %c0_34] : memref<72x768xf32, #tpu.memory_space<vmem>>, vector<8x288xf32>
    tpu.vector_store %arg5[%c32, %c0_34], %35 {strides = array<i32>} : memref<72x768xf32, #tpu.memory_space<vmem>>, vector<8x288xf32>,
    %c1_35 = arith.constant 1 : index
    %c0_36 = arith.constant 0 : index
    %c19_37 = arith.constant 19 : index
    %37 = vector.load %arg1[%c1_35, %c0_36, %c19_37] : memref<2x4x342xf32, #tpu.memory_space<vmem>>, vector<1x4x288xf32>
    %38 = vector.shape_cast %37 : vector<1x4x288xf32> to vector<4x288xf32>
    %39 = tpu.concatenate %38, %0 in 0 : vector<4x288xf32>, vector<4x288xf32> -> vector<8x288xf32>
    %c32_38 = arith.constant 32 : index
    %c384_39 = arith.constant 384 : index
    %40 = vector.load %arg5[%c32_38, %c384_39] : memref<72x768xf32, #tpu.memory_space<vmem>>, vector<8x288xf32>
    tpu.vector_store %arg5[%c32_38, %c384_39], %39 {strides = array<i32>} : memref<72x768xf32, #tpu.memory_space<vmem>>, vector<8x288xf32>,
    %c0_40 = arith.constant 0 : index
    %c0_41 = arith.constant 0 : index
    %c20 = arith.constant 20 : index
    %41 = vector.load %arg1[%c0_40, %c0_41, %c20] : memref<2x4x342xf32, #tpu.memory_space<vmem>>, vector<1x4x288xf32>
    %42 = vector.shape_cast %41 : vector<1x4x288xf32> to vector<4x288xf32>
    %43 = tpu.concatenate %42, %0 in 0 : vector<4x288xf32>, vector<4x288xf32> -> vector<8x288xf32>
    %c40 = arith.constant 40 : index
    %c0_42 = arith.constant 0 : index
    %44 = vector.load %arg5[%c40, %c0_42] : memref<72x768xf32, #tpu.memory_space<vmem>>, vector<8x288xf32>
    tpu.vector_store %arg5[%c40, %c0_42], %43 {strides = array<i32>} : memref<72x768xf32, #tpu.memory_space<vmem>>, vector<8x288xf32>,
    %c1_43 = arith.constant 1 : index
    %c0_44 = arith.constant 0 : index
    %c20_45 = arith.constant 20 : index
    %45 = vector.load %arg1[%c1_43, %c0_44, %c20_45] : memref<2x4x342xf32, #tpu.memory_space<vmem>>, vector<1x4x288xf32>
    %46 = vector.shape_cast %45 : vector<1x4x288xf32> to vector<4x288xf32>
    %47 = tpu.concatenate %46, %0 in 0 : vector<4x288xf32>, vector<4x288xf32> -> vector<8x288xf32>
    %c40_46 = arith.constant 40 : index
    %c384_47 = arith.constant 384 : index
    %48 = vector.load %arg5[%c40_46, %c384_47] : memref<72x768xf32, #tpu.memory_space<vmem>>, vector<8x288xf32>
    tpu.vector_store %arg5[%c40_46, %c384_47], %47 {strides = array<i32>} : memref<72x768xf32, #tpu.memory_space<vmem>>, vector<8x288xf32>,
    %c0_48 = arith.constant 0 : index
    %c0_49 = arith.constant 0 : index
    %c36 = arith.constant 36 : index
    %49 = vector.load %arg1[%c0_48, %c0_49, %c36] : memref<2x4x342xf32, #tpu.memory_space<vmem>>, vector<1x4x288xf32>
    %50 = vector.shape_cast %49 : vector<1x4x288xf32> to vector<4x288xf32>
    %51 = tpu.concatenate %50, %0 in 0 : vector<4x288xf32>, vector<4x288xf32> -> vector<8x288xf32>
    %c48 = arith.constant 48 : index
    %c0_50 = arith.constant 0 : index
    %52 = vector.load %arg5[%c48, %c0_50] : memref<72x768xf32, #tpu.memory_space<vmem>>, vector<8x288xf32>
    tpu.vector_store %arg5[%c48, %c0_50], %51 {strides = array<i32>} : memref<72x768xf32, #tpu.memory_space<vmem>>, vector<8x288xf32>,
    %c1_51 = arith.constant 1 : index
    %c0_52 = arith.constant 0 : index
    %c36_53 = arith.constant 36 : index
    %53 = vector.load %arg1[%c1_51, %c0_52, %c36_53] : memref<2x4x342xf32, #tpu.memory_space<vmem>>, vector<1x4x288xf32>
    %54 = vector.shape_cast %53 : vector<1x4x288xf32> to vector<4x288xf32>
    %55 = tpu.concatenate %54, %0 in 0 : vector<4x288xf32>, vector<4x288xf32> -> vector<8x288xf32>
    %c48_54 = arith.constant 48 : index
    %c384_55 = arith.constant 384 : index
    %56 = vector.load %arg5[%c48_54, %c384_55] : memref<72x768xf32, #tpu.memory_space<vmem>>, vector<8x288xf32>
    tpu.vector_store %arg5[%c48_54, %c384_55], %55 {strides = array<i32>} : memref<72x768xf32, #tpu.memory_space<vmem>>, vector<8x288xf32>,
    %c0_56 = arith.constant 0 : index
    %c0_57 = arith.constant 0 : index
    %c37 = arith.constant 37 : index
    %57 = vector.load %arg1[%c0_56, %c0_57, %c37] : memref<2x4x342xf32, #tpu.memory_space<vmem>>, vector<1x4x288xf32>
    %58 = vector.shape_cast %57 : vector<1x4x288xf32> to vector<4x288xf32>
    %59 = tpu.concatenate %58, %0 in 0 : vector<4x288xf32>, vector<4x288xf32> -> vector<8x288xf32>
    %c56 = arith.constant 56 : index
    %c0_58 = arith.constant 0 : index
    %60 = vector.load %arg5[%c56, %c0_58] : memref<72x768xf32, #tpu.memory_space<vmem>>, vector<8x288xf32>
    tpu.vector_store %arg5[%c56, %c0_58], %59 {strides = array<i32>} : memref<72x768xf32, #tpu.memory_space<vmem>>, vector<8x288xf32>,
    %c1_59 = arith.constant 1 : index
    %c0_60 = arith.constant 0 : index
    %c37_61 = arith.constant 37 : index
    %61 = vector.load %arg1[%c1_59, %c0_60, %c37_61] : memref<2x4x342xf32, #tpu.memory_space<vmem>>, vector<1x4x288xf32>
    %62 = vector.shape_cast %61 : vector<1x4x288xf32> to vector<4x288xf32>
    %63 = tpu.concatenate %62, %0 in 0 : vector<4x288xf32>, vector<4x288xf32> -> vector<8x288xf32>
    %c56_62 = arith.constant 56 : index
    %c384_63 = arith.constant 384 : index
    %64 = vector.load %arg5[%c56_62, %c384_63] : memref<72x768xf32, #tpu.memory_space<vmem>>, vector<8x288xf32>
    tpu.vector_store %arg5[%c56_62, %c384_63], %63 {strides = array<i32>} : memref<72x768xf32, #tpu.memory_space<vmem>>, vector<8x288xf32>,
    %c0_64 = arith.constant 0 : index
    %c0_65 = arith.constant 0 : index
    %c38 = arith.constant 38 : index
    %65 = vector.load %arg1[%c0_64, %c0_65, %c38] : memref<2x4x342xf32, #tpu.memory_space<vmem>>, vector<1x4x288xf32>
    %66 = vector.shape_cast %65 : vector<1x4x288xf32> to vector<4x288xf32>
    %67 = tpu.concatenate %66, %0 in 0 : vector<4x288xf32>, vector<4x288xf32> -> vector<8x288xf32>
    %c64 = arith.constant 64 : index
    %c0_66 = arith.constant 0 : index
    %68 = vector.load %arg5[%c64, %c0_66] : memref<72x768xf32, #tpu.memory_space<vmem>>, vector<8x288xf32>
    tpu.vector_store %arg5[%c64, %c0_66], %67 {strides = array<i32>} : memref<72x768xf32, #tpu.memory_space<vmem>>, vector<8x288xf32>,
    %c1_67 = arith.constant 1 : index
    %c0_68 = arith.constant 0 : index
    %c38_69 = arith.constant 38 : index
    %69 = vector.load %arg1[%c1_67, %c0_68, %c38_69] : memref<2x4x342xf32, #tpu.memory_space<vmem>>, vector<1x4x288xf32>
    %70 = vector.shape_cast %69 : vector<1x4x288xf32> to vector<4x288xf32>
    %71 = tpu.concatenate %70, %0 in 0 : vector<4x288xf32>, vector<4x288xf32> -> vector<8x288xf32>
    %c64_70 = arith.constant 64 : index
    %c384_71 = arith.constant 384 : index
    %72 = vector.load %arg5[%c64_70, %c384_71] : memref<72x768xf32, #tpu.memory_space<vmem>>, vector<8x288xf32>
    tpu.vector_store %arg5[%c64_70, %c384_71], %71 {strides = array<i32>} : memref<72x768xf32, #tpu.memory_space<vmem>>, vector<8x288xf32>,
    %c0_72 = arith.constant 0 : index
    %c0_73 = arith.constant 0 : index
    %73 = vector.load %arg2[%c0_72, %c0_73] : memref<8x72xf32, #tpu.memory_space<vmem>>, vector<8x72xf32>
    %c0_74 = arith.constant 0 : index
    %c0_75 = arith.constant 0 : index
    %74 = vector.load %arg5[%c0_74, %c0_75] : memref<72x768xf32, #tpu.memory_space<vmem>>, vector<72x768xf32>
    %cst_76 = arith.constant dense<0.000000e+00> : vector<8x768xf32>
    %75 = tpu.matmul %73, %74, %cst_76 {dimension_numbers = #tpu.dot_dimension_numbers<[1], [0], [0], [1], [0, 0, 1, 1], [], []>} : vector<8x72xf32>, vector<72x768xf32>, vector<8x768xf32> -> vector<8x768xf32>
    %c0_77 = arith.constant 0 : index
    %c0_78 = arith.constant 0 : index
    %76 = vector.load %arg3[%c0_77, %c0_78] : memref<8x1xf32, #tpu.memory_space<vmem>>, vector<8x1xf32>
    %77 = vector.broadcast %76 : vector<8x1xf32> to vector<8x768xf32>
    %78 = arith.addf %75, %77 : vector<8x768xf32>
    %cst_79 = arith.constant 0.000000e+00 : f32
    %79 = vector.broadcast %cst_79 : f32 to vector<8x768xf32>
    %80 = arith.maximumf %78, %79 : vector<8x768xf32>
    %81 = vector.extract_strided_slice %80 {offsets = [0, 0], sizes = [8, 384], strides = [1, 1]} : vector<8x768xf32> to vector<8x384xf32>
    %c0_80 = arith.constant 0 : index
    %c0_81 = arith.constant 0 : index
    %c0_82 = arith.constant 0 : index
    %82 = vector.load %arg4[%c0_80, %c0_81, %c0_82] : memref<2x8x384xf32, #tpu.memory_space<vmem>>, vector<1x8x384xf32>
    %83 = vector.shape_cast %82 : vector<1x8x384xf32> to vector<8x384xf32>
    %84 = vector.shape_cast %81 : vector<8x384xf32> to vector<1x8x384xf32>
    tpu.vector_store %arg4[%c0_80, %c0_81, %c0_82], %84 {strides = array<i32>} : memref<2x8x384xf32, #tpu.memory_space<vmem>>, vector<1x8x384xf32>,
    %85 = vector.extract_strided_slice %80 {offsets = [0, 384], sizes = [8, 384], strides = [1, 1]} : vector<8x768xf32> to vector<8x384xf32>
    %c1_83 = arith.constant 1 : index
    %c0_84 = arith.constant 0 : index
    %c0_85 = arith.constant 0 : index
    %86 = vector.load %arg4[%c1_83, %c0_84, %c0_85] : memref<2x8x384xf32, #tpu.memory_space<vmem>>, vector<1x8x384xf32>
    %87 = vector.shape_cast %86 : vector<1x8x384xf32> to vector<8x384xf32>
    %88 = vector.shape_cast %85 : vector<8x384xf32> to vector<1x8x384xf32>
    tpu.vector_store %arg4[%c1_83, %c0_84, %c0_85], %88 {strides = array<i32>} : memref<2x8x384xf32, #tpu.memory_space<vmem>>, vector<1x8x384xf32>,
    return
  }
  func.func @transform_0(%arg0: i32) -> (i32, i32, i32) {
    %c0_i32 = arith.constant 0 : i32
    %c0_i32_0 = arith.constant 0 : i32
    %c0_i32_1 = arith.constant 0 : i32
    return %arg0, %c0_i32, %c0_i32_0 : i32, i32, i32
  }
  func.func @transform_1(%arg0: i32) -> (i32, i32) {
    %c0_i32 = arith.constant 0 : i32
    %c0_i32_0 = arith.constant 0 : i32
    %c0_i32_1 = arith.constant 0 : i32
    return %c0_i32, %c0_i32_0 : i32, i32
  }
  func.func @transform_2(%arg0: i32) -> (i32, i32) {
    %c0_i32 = arith.constant 0 : i32
    %c0_i32_0 = arith.constant 0 : i32
    %c0_i32_1 = arith.constant 0 : i32
    return %c0_i32, %c0_i32_0 : i32, i32
  }
  func.func @transform_3(%arg0: i32) -> (i32, i32, i32) {
    %c0_i32 = arith.constant 0 : i32
    %c0_i32_0 = arith.constant 0 : i32
    %c0_i32_1 = arith.constant 0 : i32
    return %arg0, %c0_i32, %c0_i32_0 : i32, i32, i32
  }
}

</mosaic_0001>

<bundles_post_ra>
// kernel: tpu_custom_call.1
= control target key start
LH: loop header
LB: loop body
LE: loop exit
PB: predicated region body
PF: predicated region fallthrough
CT: control target
= control target key end

     0   :  { %8 = vsyncpa [#allocation4], 0  ;;  %s1161_s0 = inlined_call_operand.hbm [shape: f32[2,4,342], index: 0, kind: input, shape index: {}]   ;;  %s1162_s1 = inlined_call_operand.vmem [shape: f32[8,72], index: 1, kind: input, shape index: {}]   ;;  %s1163_s2 = inlined_call_operand.vmem [shape: f32[8,1], index: 2, kind: input, shape index: {}]   ;;  %s1164_s3 = inlined_call_operand.hbm [shape: f32[2,8,384], index: 3, kind: output, shape index: {}]  }
   0x1   :  { %9 = vsyncpa [#allocation5], 0  ;;  %s900_s12 = smov [#allocation3]   ;;  %s852_s16 = scalar_lea.hbm %s1161_s0, 384 }
   0x2   :  { %s15_s13 = sshll.u32 %s900_s12, 4  ;;  %p853_p0 = scmp.ne.s32.totalorder %s1161_s0, %s852_s16  ;;  %s16_s13 = int_to_ptr.vmem [resolvable:$true] %s15_s13 }
   0x3   :  { %p856_p1 = scmp.lt.u32.totalorder %s852_s16, %s1161_s0 }
   0x5   :  { %p858_p2 = pnand %p856_p1, %p853_p0 }
   0x7   :  { %861 = shalt.err (!%p858_p2)
}
   0x8   :  { %s862_s21 = scalar_lea.vmem %s16_s13, 384  ;;  %p867_p4 = scmp.lt.s32.totalorder %s16_s13, %s16_s13 }
   0x9   :  { %p863_p3 = scmp.ne.s32.totalorder %s16_s13, %s862_s21  ;;  %p868_p5 = scmp.lt.s32.totalorder %s862_s21, %s862_s21 }
   0xb   :  { %p869_p6 = por %p868_p5, %p867_p4 }
   0xd   :  { %p870_p7 = pnand %p869_p6, %p863_p3 }
   0xf   :  { %873 = shalt.err (!%p870_p7)
}
  0x10   :  { %s901_s22 = smov 192   ;;  %s902_s23 = smov 12  }
  0x11   :  { %21 = dma.hbm_to_vmem [thread:$0]  %s1161_s0, 384, %s16_s13, [#allocation4], %s901_s22, %s901_s22, %s902_s23  }
  0x12   :  { %896 = dma.done.wait [#allocation4], 384  }
  0x13   :  { %897 = vsyncadd [#allocation4], 4294966912  ;;  %vm34_vm0 = vcmask 1043456   ;;  %v55_v0 = vld [vmem:[#allocation3 + $0x8] sm:$0xf]  ;;  %v949_v1 = vld [vmem:[#allocation3] sm:$0xff] }
  0x14   :  { %v106_v2 = vld [vmem:[#allocation3 + $0x8] sm:$0xf]  ;;  %v61_v3 = vsel %vm34_vm0, %v55_v0, 0.0  ;;  %v954_v4 = vsel %vm34_vm0, %v949_v1, 0.0  ;;  %v958_v5 = vcombine.high %v949_v1, %v949_v1  ;;  %v960_v6 = vld [vmem:[#allocation3 + $0xc] sm:$0xff]  ;;  %s903_s0 = smov 127  }
  0x15   :  { %69 = vrot.lane.b32.xlu0 %v61_v3, %s903_s0  ;;  %65 = vrot.lane.b32.xlu1 %v954_v4, %s903_s0  ;;  %v967_v7 = vsel %vm34_vm0, %v960_v6, 0.0  ;;  %v971_v8 = vcombine.high %v960_v6, %v960_v6  ;;  %v112_v9 = vsel %vm34_vm0, %v106_v2, 0.0  ;;  %s904_s26 = smov 126   ;;  %v157_v12 = vld [vmem:[#allocation3 + $0x8] sm:$0xf]  ;;  %vm40_vm1 = vcmask 261120  }
  0x16   :  { %v111_v10 = vsel %vm34_vm0, %v958_v5, 0.0  ;;  %s905_s27 = smov 110   ;;  %v30_v13 = vld [vmem:[#allocation3 + $0x8] sm:$0xf]  ;;  %v163_v14 = vsel %vm34_vm0, %v157_v12, 0.0  ;;  %s906_s28 = smov 109  }
  0x17   :  { %v978_v11 = vsel %vm34_vm0, %v971_v8, 0.0  ;;  %v37_v15 = vsel %vm34_vm0, %v30_v13, 0.0  ;;  %v208_v16 = vld [vmem:[#allocation3 + $0x8] sm:$0xf]  ;;  %s907_s29 = smov 108   ;;  %s908_s30 = smov 92  }
  0x18   :  { %41 = vst.msk [vmem:[#allocation2 + $0x10] sm:$0xff] %vm40_vm1, %v37_v15  ;;  %v214_v17 = vsel %vm34_vm0, %v208_v16, 0.0  ;;  %v259_v18 = vld [vmem:[#allocation3 + $0x8] sm:$0xf]  ;;  %s909_s4 = smov 91   ;;  %s910_s5 = smov 90  }
  0x19   :  { %120 = vrot.lane.b32.xlu0 %v112_v9, %s904_s26  ;;  %118 = vrot.lane.b32.xlu1 %v111_v10, %s904_s26  ;;  %v265_v19 = vsel %vm34_vm0, %v259_v18, 0.0  ;;  %v310_v20 = vld [vmem:[#allocation3 + $0x8] sm:$0xf]  ;;  %v44_v24 = vld [vmem:[#allocation3 + $0x14] sm:$0xf]  ;;  %v911_v30 = vmov 0.0  }
  0x1a   :  { %v316_v21 = vsel %vm34_vm0, %v310_v20, 0.0  ;;  %v361_v22 = vld [vmem:[#allocation3 + $0x8] sm:$0xf]  ;;  %v50_v25 = vsel %vm34_vm0, %v44_v24, 0.0  ;;  %v81_v26 = vld [vmem:[#allocation3 + $0x14] sm:$0xf]  ;;  %591 = vmatprep.mubr.f32.mxu0 %v911_v30  ;;  %662 = vmatprep.mubr.f32.mxu1 %v911_v30 }
  0x1b   :  { %v367_v23 = vsel %vm34_vm0, %v361_v22, 0.0  ;;  %53 = vst.msk [vmem:[#allocation2 + $0x28] sm:$0xff] %vm40_vm1, %v50_v25  ;;  %v412_v27 = vld [vmem:[#allocation3 + $0x8] sm:$0xf]  ;;  %v87_v28 = vsel %vm34_vm0, %v81_v26, 0.0  ;;  %v912_v45 = vmov 0  }
  0x1c   :  { %v418_v29 = vsel %vm34_vm0, %v412_v27, 0.0  ;;  %v132_v31 = vld [vmem:[#allocation3 + $0x14] sm:$0xf]  ;;  %837 = vset.pattern.permute.xlu0 %v912_v45  ;;  %vm122_vm2 = vcmask 1031168   ;;  %vm71_vm3 = vcmask 1039360   ;;  %vm173_vm4 = vcmask 900096  }
  0x1d   :  { %169 = vrot.lane.b32.xlu1 %v111_v10, %s905_s27  ;;  %67 = vrot.lane.b32.xlu0 %v111_v10, %s903_s0  ;;  %v138_v32 = vsel %vm34_vm0, %v132_v31, 0.0  ;;  %v183_v33 = vld [vmem:[#allocation3 + $0x14] sm:$0xf]  ;;  %vm913_vm5 = vmmov 1   ;;  %vm224_vm7 = vcmask 891904   ;;  %vm275_vm8 = vcmask 883712  }
  0x1e   :  { %v189_v34 = vsel %vm34_vm0, %v183_v33, 0.0  ;;  %v234_v35 = vld [vmem:[#allocation3 + $0x14] sm:$0xf]  ;;  %vm1078_vm6 = vmpackc.low %vm913_vm5, %vm34_vm0  ;;  %vm326_vm9 = vcmask 752640   ;;  %vm377_vm10 = vcmask 744448   ;;  %vm428_vm11 = vcmask 736256  }
  0x1f   :  { %v240_v36 = vsel %vm34_vm0, %v234_v35, 0.0  ;;  %v285_v37 = vld [vmem:[#allocation3 + $0x14] sm:$0xf]  ;;  %v465_v33 = vld [vmem:[#allocation2 + $0x10] sm:$0xff]  ;;  %vm523_vm12 = vcmask 588800  }
  0x20   :  { %v291_v38 = vsel %vm34_vm0, %v285_v37, 0.0  ;;  %v336_v39 = vld [vmem:[#allocation3 + $0x14] sm:$0xf] }
  0x21   :  { %116 = vrot.lane.b32.xlu1 %v954_v4, %s904_s26  ;;  %171 = vrot.lane.b32.xlu0 %v163_v14, %s905_s27  ;;  %v342_v40 = vsel %vm34_vm0, %v336_v39, 0.0  ;;  %v387_v41 = vld [vmem:[#allocation3 + $0x14] sm:$0xf] }
  0x22   :  { %v393_v42 = vsel %vm34_vm0, %v387_v41, 0.0  ;;  %v438_v43 = vld [vmem:[#allocation3 + $0x14] sm:$0xf]  ;;  %v468_v45 = vld [vmem:[#allocation2 + $0x28] sm:$0xff] }
  0x23   :  { %v444_v44 = vsel %vm34_vm0, %v438_v43, 0.0  ;;  %v517_v46 = vld [vmem:[%s1163_s2] sm:$0xff] }
  0x25   :  { %220 = vrot.lane.b32.xlu1 %v111_v10, %s906_s28  ;;  %167 = vrot.lane.b32.xlu0 %v954_v4, %s905_s27 }
  0x29   :  { %271 = vrot.lane.b32.xlu1 %v111_v10, %s907_s29  ;;  %222 = vrot.lane.b32.xlu0 %v214_v17, %s906_s28 }
  0x2d   :  { %218 = vrot.lane.b32.xlu1 %v954_v4, %s906_s28  ;;  %273 = vrot.lane.b32.xlu0 %v265_v19, %s907_s29 }
  0x31   :  { %322 = vrot.lane.b32.xlu1 %v111_v10, %s908_s30  ;;  %269 = vrot.lane.b32.xlu0 %v954_v4, %s907_s29 }
  0x35   :  { %373 = vrot.lane.b32.xlu1 %v111_v10, %s909_s4  ;;  %324 = vrot.lane.b32.xlu0 %v316_v21, %s908_s30 }
  0x39   :  { %320 = vrot.lane.b32.xlu1 %v954_v4, %s908_s30  ;;  %375 = vrot.lane.b32.xlu0 %v367_v23, %s909_s4 }
  0x3d   :  { %91 = vrot.lane.b32.xlu1 %v967_v7, %s903_s0  ;;  %371 = vrot.lane.b32.xlu0 %v954_v4, %s909_s4 }
  0x41   :  { %424 = vrot.lane.b32.xlu1 %v111_v10, %s910_s5  ;;  %93 = vrot.lane.b32.xlu0 %v978_v11, %s903_s0 }
  0x45   :  { %95 = vrot.lane.b32.xlu1 %v87_v28, %s903_s0  ;;  %426 = vrot.lane.b32.xlu0 %v418_v29, %s910_s5 }
  0x49   :  { %142 = vrot.lane.b32.xlu1 %v967_v7, %s904_s26  ;;  %422 = vrot.lane.b32.xlu0 %v954_v4, %s910_s5 }
  0x4d   :  { %193 = vrot.lane.b32.xlu1 %v967_v7, %s905_s27  ;;  %144 = vrot.lane.b32.xlu0 %v978_v11, %s904_s26 }
  0x51   :  { %146 = vrot.lane.b32.xlu1 %v138_v32, %s904_s26  ;;  %195 = vrot.lane.b32.xlu0 %v978_v11, %s905_s27 }
  0x55   :  { %244 = vrot.lane.b32.xlu1 %v967_v7, %s906_s28  ;;  %197 = vrot.lane.b32.xlu0 %v189_v34, %s905_s27 }
  0x59   :  { %295 = vrot.lane.b32.xlu1 %v967_v7, %s907_s29  ;;  %246 = vrot.lane.b32.xlu0 %v978_v11, %s906_s28 }
  0x5d   :  { %248 = vrot.lane.b32.xlu1 %v240_v36, %s906_s28  ;;  %297 = vrot.lane.b32.xlu0 %v978_v11, %s907_s29 }
  0x61   :  { %346 = vrot.lane.b32.xlu1 %v967_v7, %s908_s30  ;;  %299 = vrot.lane.b32.xlu0 %v291_v38, %s907_s29 }
  0x65   :  { %397 = vrot.lane.b32.xlu1 %v967_v7, %s909_s4  ;;  %348 = vrot.lane.b32.xlu0 %v978_v11, %s908_s30 }
  0x69   :  { %350 = vrot.lane.b32.xlu1 %v342_v40, %s908_s30  ;;  %399 = vrot.lane.b32.xlu0 %v978_v11, %s909_s4 }
  0x6d   :  { %401 = vrot.lane.b32.xlu0 %v393_v42, %s909_s4  ;;  %448 = vrot.lane.b32.xlu1 %v967_v7, %s910_s5 }
  0x71   :  { %450 = vrot.lane.b32.xlu0 %v978_v11, %s910_s5  ;;  %452 = vrot.lane.b32.xlu1 %v444_v44, %s910_s5  ;;  %v1115_v44 = vld [vmem:[%s1162_s1] sm:$0xff]  ;;  %s914_s1 = smov [#allocation6]  }
  0x72   :  { %s758_s9 = sshll.u32 %s914_s1, 4  ;;  %s759_s9 = int_to_ptr.vmem [resolvable:$true] %s758_s9 }
  0x73   :  { %s874_s10 = scalar_lea.vmem %s759_s9, 768  ;;  %p879_p9 = scmp.lt.s32.totalorder %s759_s9, %s759_s9 }
  0x74   :  { %p875_p8 = scmp.ne.s32.totalorder %s759_s9, %s874_s10  ;;  %p880_p10 = scmp.lt.s32.totalorder %s874_s10, %s874_s10 }
  0x75   :  { %520 = vperm.xlu0 %837, %v517_v46  }
  0x76   :  { %p881_p11 = por %p880_p10, %p879_p9 }
  0x78   :  { %p882_p12 = pnand %p881_p11, %p875_p8 }
  0x87   :  { %v70_v47 = vpop.permute.xlu0 %69  ;;  %v66_v48 = vpop.permute.xlu1 %65 }
  0x88   :  { %79 = vst.msk [vmem:[#allocation2 + $0x40] sm:$0xff] %vm40_vm1, %v70_v47 }
  0x8b   :  { %v121_v49 = vpop.permute.xlu0 %120  ;;  %v119_v50 = vpop.permute.xlu1 %118 }
  0x8c   :  { %130 = vst.msk [vmem:[#allocation2 + $0x70] sm:$0xff] %vm40_vm1, %v121_v49  ;;  %v124_v51 = vsel %vm122_vm2, %v119_v50, %v121_v49 }
  0x8f   :  { %v170_v52 = vpop.permute.xlu1 %169  ;;  %v68_v53 = vpop.permute.xlu0 %67  ;;  %v471_v34 = vld [vmem:[#allocation2 + $0x40] sm:$0xff] }
  0x90   :  { %v72_v54 = vsel %vm71_vm3, %v66_v48, %v68_v53  ;;  %v73_v55 = vsel %vm71_vm3, %v68_v53, %v70_v47  ;;  %v791_v36 = vpack.c.bf16 %v471_v34, %v465_v33 }
  0x91   :  { %v841_v59 = vpack.c.bf16 %v73_v55, %v958_v5  ;;  %v844_v62 = vpack.c.bf16 %v72_v54, %v949_v1 }
  0x93   :  { %v117_v56 = vpop.permute.xlu1 %116  ;;  %v172_v57 = vpop.permute.xlu0 %171  ;;  %842 = vmatprep.subr.msk.bf16.mxu0 %vm1078_vm6, %v841_v59 }
  0x94   :  { %v123_v60 = vsel %vm122_vm2, %v117_v56, %v119_v50  ;;  %v175_v61 = vsel %vm173_vm4, %v170_v52, %v172_v57  ;;  %181 = vst.msk [vmem:[#allocation2 + $0xa0] sm:$0xff] %vm40_vm1, %v172_v57  ;;  %845 = vmatpush1.bf16.msk.msra.mxu0 %vm1078_vm6, %v844_v62 }
  0x95   :  { %v777_v63 = vpack.c.bf16 %v175_v61, %v124_v51 }
  0x97   :  { %v221_v0 = vpop.permute.xlu1 %220  ;;  %v168_v2 = vpop.permute.xlu0 %167  ;;  %778 = vmatprep.subr.bf16.mxu0 %v777_v63 }
  0x98   :  { %v174_v3 = vsel %vm173_vm4, %v168_v2, %v170_v52 }
  0x99   :  { %v779_v4 = vpack.c.bf16 %v174_v3, %v123_v60 }
  0x9b   :  { %v272_v5 = vpop.permute.xlu1 %271  ;;  %v223_v7 = vpop.permute.xlu0 %222  ;;  %780 = vmatpush1.bf16.msra.mxu0 %v779_v4  ;;  %v483_v54 = vld [vmem:[#allocation2 + $0xa0] sm:$0xff] }
  0x9c   :  { %v226_v9 = vsel %vm224_vm7, %v221_v0, %v223_v7  ;;  %232 = vst.msk [vmem:[#allocation2 + $0xd0] sm:$0xff] %vm40_vm1, %v223_v7 }
  0x9f   :  { %v219_v1 = vpop.permute.xlu1 %218  ;;  %v274_v10 = vpop.permute.xlu0 %273 }
  0xa0   :  { %v225_v11 = vsel %vm224_vm7, %v219_v1, %v221_v0  ;;  %v277_v12 = vsel %vm275_vm8, %v272_v5, %v274_v10  ;;  %283 = vst.msk [vmem:[#allocation2 + $0x100] sm:$0xff] %vm40_vm1, %v274_v10 }
  0xa1   :  { %v781_v13 = vpack.c.bf16 %v277_v12, %v226_v9 }
  0xa3   :  { %v323_v14 = vpop.permute.xlu1 %322  ;;  %v270_v15 = vpop.permute.xlu0 %269  ;;  %782 = vmatprep.subr.bf16.mxu0 %v781_v13  ;;  %v489_v12 = vld [vmem:[#allocation2 + $0xd0] sm:$0xff] }
  0xa4   :  { %v276_v16 = vsel %vm275_vm8, %v270_v15, %v272_v5 }
  0xa5   :  { %v783_v17 = vpack.c.bf16 %v276_v16, %v225_v11 }
  0xa7   :  { %v374_v18 = vpop.permute.xlu1 %373  ;;  %v325_v19 = vpop.permute.xlu0 %324  ;;  %784 = vmatpush1.bf16.msra.mxu0 %v783_v17  ;;  %v495_v5 = vld [vmem:[#allocation2 + $0x100] sm:$0xff] }
  0xa8   :  { %v328_v20 = vsel %vm326_vm9, %v323_v14, %v325_v19  ;;  %334 = vst.msk [vmem:[#allocation2 + $0x130] sm:$0xff] %vm40_vm1, %v325_v19  ;;  %v799_v13 = vpack.c.bf16 %v495_v5, %v489_v12 }
  0xab   :  { %v321_v21 = vpop.permute.xlu1 %320  ;;  %v376_v22 = vpop.permute.xlu0 %375 }
  0xac   :  { %v327_v23 = vsel %vm326_vm9, %v321_v21, %v323_v14  ;;  %v379_v24 = vsel %vm377_vm10, %v374_v18, %v376_v22  ;;  %385 = vst.msk [vmem:[#allocation2 + $0x160] sm:$0xff] %vm40_vm1, %v376_v22 }
  0xad   :  { %v785_v25 = vpack.c.bf16 %v379_v24, %v328_v20 }
  0xaf   :  { %v92_v26 = vpop.permute.xlu1 %91  ;;  %v372_v27 = vpop.permute.xlu0 %371  ;;  %786 = vmatprep.subr.bf16.mxu0 %v785_v25 }
  0xb0   :  { %v378_v28 = vsel %vm377_vm10, %v372_v27, %v374_v18 }
  0xb1   :  { %v787_v29 = vpack.c.bf16 %v378_v28, %v327_v23 }
  0xb3   :  { %v425_v31 = vpop.permute.xlu1 %424  ;;  %v94_v32 = vpop.permute.xlu0 %93  ;;  %788 = vmatpush1.bf16.msra.mxu0 %v787_v29  ;;  %v507_v24 = vld [vmem:[#allocation2 + $0x160] sm:$0xff] }
  0xb4   :  { %v97_v35 = vsel %vm71_vm3, %v92_v26, %v94_v32 }
  0xb5   :  { %v847_v39 = vpack.c.bf16 %v97_v35, %v960_v6 }
  0xb7   :  { %v96_v37 = vpop.permute.xlu1 %95  ;;  %v427_v38 = vpop.permute.xlu0 %426  ;;  %848 = vmatprep.subr.msk.bf16.mxu1 %vm1078_vm6, %v847_v39 }
  0xb8   :  { %v98_v40 = vsel %vm71_vm3, %v94_v32, %v96_v37  ;;  %104 = vst.msk [vmem:[#allocation2 + $0x58] sm:$0xff] %vm40_vm1, %v96_v37  ;;  %v430_v41 = vsel %vm428_vm11, %v425_v31, %v427_v38  ;;  %436 = vst.msk [vmem:[#allocation2 + $0x190] sm:$0xff] %vm40_vm1, %v427_v38  ;;  %792 = vmatpush1.bf16.msra.mxu1 %v791_v36 }
  0xb9   :  { %543 = vmatprep.subr.mxu0 %v430_v41  ;;  %v850_v53 = vpack.c.bf16 %v98_v40, %v971_v8 }
  0xbb   :  { %v143_v42 = vpop.permute.xlu1 %142  ;;  %v423_v43 = vpop.permute.xlu0 %422 }
  0xbc   :  { %v429_v6 = vsel %vm428_vm11, %v423_v43, %v425_v31  ;;  %v501_v31 = vld [vmem:[#allocation2 + $0x130] sm:$0xff] }
  0xbd   :  { %544 = vmatpush1.msra.mxu0 %v429_v6  ;;  %v803_v32 = vpack.c.bf16 %v507_v24, %v501_v31 }
  0xbe   :  { %770 = vmatmul.mubr.msk.f32.vlgmr.msra.gmra.mrb[0].mxu0 %vm523_vm12, %v1115_v44 }
  0xbf   :  { %v194_v46 = vpop.permute.xlu1 %193  ;;  %v145_v47 = vpop.permute.xlu0 %144  ;;  %v474_v48 = vld [vmem:[#allocation2 + $0x58] sm:$0xff]  ;;  %733 = vmatprep.mubr.f32.mxu0 %v911_v30  ;;  %v477_v30 = vld [vmem:[#allocation2 + $0x70] sm:$0xff] }
  0xc0   :  { %v148_v49 = vsel %vm122_vm2, %v143_v42, %v145_v47  ;;  %v805_v50 = vpack.c.bf16 %v474_v48, %v468_v45  ;;  %v795_v59 = vpack.c.bf16 %v483_v54, %v477_v30  ;;  %v513_v40 = vld [vmem:[#allocation2 + $0x190] sm:$0xff] }
  0xc2   :  { %806 = vmatprep.subr.bf16.mxu0 %v805_v50 }
  0xc3   :  { %v147_v51 = vpop.permute.xlu1 %146  ;;  %v196_v52 = vpop.permute.xlu0 %195  ;;  %851 = vmatpush1.bf16.msk.msra.mxu0 %vm1078_vm6, %v850_v53 }
  0xc4   :  { %v149_v55 = vsel %vm122_vm2, %v145_v47, %v147_v51  ;;  %155 = vst.msk [vmem:[#allocation2 + $0x88] sm:$0xff] %vm40_vm1, %v147_v51  ;;  %v199_v56 = vsel %vm173_vm4, %v194_v46, %v196_v52 }
  0xc5   :  { %v793_v57 = vpack.c.bf16 %v199_v56, %v148_v49 }
  0xc7   :  { %v245_v60 = vpop.permute.xlu1 %244  ;;  %v198_v61 = vpop.permute.xlu0 %197  ;;  %794 = vmatprep.subr.bf16.mxu1 %v793_v57 }
  0xc8   :  { %v200_v62 = vsel %vm173_vm4, %v196_v52, %v198_v61  ;;  %206 = vst.msk [vmem:[#allocation2 + $0xb8] sm:$0xff] %vm40_vm1, %v198_v61  ;;  %796 = vmatpush1.bf16.msra.mxu1 %v795_v59 }
  0xc9   :  { %v811_v10 = vpack.c.bf16 %v200_v62, %v149_v55 }
  0xcb   :  { %v296_v8 = vpop.permute.xlu1 %295  ;;  %v247_v58 = vpop.permute.xlu0 %246  ;;  %v480_v3 = vld [vmem:[#allocation2 + $0x88] sm:$0xff] }
  0xcc   :  { %v250_v63 = vsel %vm224_vm7, %v245_v60, %v247_v58 }
  0xcf   :  { %v249_v0 = vpop.permute.xlu1 %248  ;;  %v298_v2 = vpop.permute.xlu0 %297  ;;  %v486_v4 = vld [vmem:[#allocation2 + $0xb8] sm:$0xff] }
  0xd0   :  { %v251_v7 = vsel %vm224_vm7, %v247_v58, %v249_v0  ;;  %257 = vst.msk [vmem:[#allocation2 + $0xe8] sm:$0xff] %vm40_vm1, %v249_v0  ;;  %v301_v9 = vsel %vm275_vm8, %v296_v8, %v298_v2  ;;  %v809_v1 = vpack.c.bf16 %v486_v4, %v480_v3 }
  0xd1   :  { %v797_v11 = vpack.c.bf16 %v301_v9, %v250_v63 }
  0xd2   :  { %810 = vmatprep.subr.bf16.mxu0 %v809_v1 }
  0xd3   :  { %v347_v14 = vpop.permute.xlu1 %346  ;;  %v300_v15 = vpop.permute.xlu0 %299  ;;  %812 = vmatpush1.bf16.msra.mxu0 %v811_v10  ;;  %798 = vmatprep.subr.bf16.mxu1 %v797_v11 }
  0xd4   :  { %v302_v16 = vsel %vm275_vm8, %v298_v2, %v300_v15  ;;  %308 = vst.msk [vmem:[#allocation2 + $0x118] sm:$0xff] %vm40_vm1, %v300_v15  ;;  %800 = vmatpush1.bf16.msra.mxu1 %v799_v13 }
  0xd5   :  { %v815_v28 = vpack.c.bf16 %v302_v16, %v251_v7 }
  0xd7   :  { %v398_v17 = vpop.permute.xlu1 %397  ;;  %v349_v18 = vpop.permute.xlu0 %348  ;;  %v492_v22 = vld [vmem:[#allocation2 + $0xe8] sm:$0xff] }
  0xd8   :  { %v352_v19 = vsel %vm326_vm9, %v347_v14, %v349_v18 }
  0xdb   :  { %v351_v20 = vpop.permute.xlu1 %350  ;;  %v400_v21 = vpop.permute.xlu0 %399  ;;  %v498_v23 = vld [vmem:[#allocation2 + $0x118] sm:$0xff] }
  0xdc   :  { %v353_v25 = vsel %vm326_vm9, %v349_v18, %v351_v20  ;;  %359 = vst.msk [vmem:[#allocation2 + $0x148] sm:$0xff] %vm40_vm1, %v351_v20  ;;  %v403_v26 = vsel %vm377_vm10, %v398_v17, %v400_v21  ;;  %v813_v27 = vpack.c.bf16 %v498_v23, %v492_v22 }
  0xdd   :  { %v801_v29 = vpack.c.bf16 %v403_v26, %v352_v19 }
  0xde   :  { %814 = vmatprep.subr.bf16.mxu0 %v813_v27 }
  0xdf   :  { %v402_v33 = vpop.permute.xlu0 %401  ;;  %816 = vmatpush1.bf16.msra.mxu0 %v815_v28  ;;  %v449_v34 = vpop.permute.xlu1 %448  ;;  %802 = vmatprep.subr.bf16.mxu1 %v801_v29 }
  0xe0   :  { %v404_v35 = vsel %vm377_vm10, %v400_v21, %v402_v33  ;;  %410 = vst.msk [vmem:[#allocation2 + $0x178] sm:$0xff] %vm40_vm1, %v402_v33  ;;  %804 = vmatpush1.bf16.msra.mxu1 %v803_v32 }
  0xe1   :  { %v819_v6 = vpack.c.bf16 %v404_v35, %v353_v25 }
  0xe3   :  { %v451_v36 = vpop.permute.xlu0 %450  ;;  %v453_v37 = vpop.permute.xlu1 %452  ;;  %v504_v41 = vld [vmem:[#allocation2 + $0x148] sm:$0xff] }
  0xe4   :  { %v454_v38 = vsel %vm428_vm11, %v449_v34, %v451_v36  ;;  %v455_v39 = vsel %vm428_vm11, %v451_v36, %v453_v37  ;;  %461 = vst.msk [vmem:[#allocation2 + $0x1a8] sm:$0xff] %vm40_vm1, %v453_v37 }
  0xe5   :  { %614 = vmatprep.subr.mxu1 %v454_v38 }
  0xe6   :  { %615 = vmatpush1.msra.mxu1 %v513_v40 }
  0xe7   :  { %v510_v42 = vld [vmem:[#allocation2 + $0x178] sm:$0xff]  ;;  %771 = vmatmul.mubr.msk.f32.vlgmr.msra.gmra.mrb[0].mxu1 %vm523_vm12, %v1115_v44 }
  0xe8   :  { %v817_v43 = vpack.c.bf16 %v510_v42, %v504_v41 }
  0xea   :  { %818 = vmatprep.subr.bf16.mxu0 %v817_v43 }
  0xeb   :  { %820 = vmatpush1.bf16.msra.mxu0 %v819_v6  ;;  %v516_v45 = vld [vmem:[#allocation2 + $0x1a8] sm:$0xff] }
  0xec   :  { %685 = vmatprep.subr.mxu0 %v516_v45 }
  0xef   :  { %686 = vmatpush1.msra.mxu0 %v455_v39 }
  0xf0   :  { %772 = vmatmul.mubr.msk.f32.vlgmr.msra.gmra.mrb[2].mxu0 %vm523_vm12, %v1115_v44 }
  0xf4   :  { %v521_v46 = vpop.permute.xlu0 %520 }
 0x191   :  { %v593_v47 = vpop.f32.mrb[0].mxu0 }
 0x192   :  { %v594_v48 = vadd.f32 %v593_v47, %v521_v46  ;;  %v595_v49 = vpop.f32.mrb[1].mxu0 }
 0x193   :  { %v596_v50 = vadd.f32 %v595_v49, %v521_v46 }
 0x194   :  { %v740_v51 = vmax.f32 %v594_v48, 0.0 }
 0x195   :  { %v741_v52 = vmax.f32 %v596_v50, 0.0 }
 0x196   :  { %746 = vst [vmem:[#allocation6] sm:$0xff] %v740_v51 }
 0x197   :  { %747 = vst [vmem:[#allocation6 + $0x8] sm:$0xff] %v741_v52 }
 0x1ba   :  { %v664_v53 = vpop.f32.mrb[0].mxu1 }
 0x1bb   :  { %v665_v54 = vadd.f32 %v664_v53, %v521_v46  ;;  %v666_v55 = vpop.f32.mrb[1].mxu1 }
 0x1bc   :  { %v667_v56 = vadd.f32 %v666_v55, %v521_v46 }
 0x1bd   :  { %v742_v57 = vmax.f32 %v665_v54, 0.0 }
 0x1be   :  { %v743_v30 = vmax.f32 %v667_v56, 0.0 }
 0x1bf   :  { %748 = vst [vmem:[#allocation6 + $0x10] sm:$0xff] %v742_v57 }
 0x1c0   :  { %750 = vst [vmem:[#allocation6 + $0x18] sm:$0xff] %v743_v30 }
 0x1c3   :  { %v735_v59 = vpop.f32.mrb[2].mxu0 }
 0x1c4   :  { %v736_v44 = vadd.f32 %v735_v59, %v521_v46  ;;  %v737_v60 = vpop.f32.mrb[3].mxu0 }
 0x1c5   :  { %v738_v61 = vadd.f32 %v737_v60, %v521_v46 }
 0x1c6   :  { %v744_v62 = vmax.f32 %v736_v44, 0.0 }
 0x1c7   :  { %v745_v8 = vmax.f32 %v738_v61, 0.0 }
 0x1c8   :  { %751 = vst [vmem:[#allocation6 + $0x20] sm:$0xff] %v744_v62 }
 0x1c9   :  { %752 = vst [vmem:[#allocation6 + $0x28] sm:$0xff] %v745_v8 }
 0x1ca   :  { %885 = shalt.err (!%p882_p12)
}
 0x1cb   :  { %s886_s13 = scalar_lea.hbm %s1164_s3, 768 }
 0x1cc   :  { %p887_p13 = scmp.ne.s32.totalorder %s1164_s3, %s886_s13  ;;  %p890_p0 = scmp.lt.u32.totalorder %s886_s13, %s1164_s3 }
 0x1ce   :  { %p892_p1 = pnand %p890_p0, %p887_p13 }
 0x1d0   :  { %895 = shalt.err (!%p892_p1)
}
 0x1d1   :  { %s915_s18 = smov 384   ;;  %s916_s19 = smov 24  }
 0x1d2   :  { %764 = dma.vmem_to_hbm [thread:$0]  %s759_s9, 768, %s1164_s3, [#allocation5], %s915_s18, %s915_s18, %s916_s19  }
 0x1d3   :  { %898 = dma.done.wait [#allocation5], 768  }
 0x1d4   :  { %899 = vsyncadd [#allocation5], 4294966528 }
 0x1d5   :  { %768 = vsyncpa [#allocation4], 1 }
 0x1d6   :  { %769 = vsyncpa [#allocation5], 1 }

</bundles_post_ra>
